<compile_context>
chip_gen: v5e
topology: v5e:2x2
jax: 0.10.0
libtpu: 0.0.40
codegen_flags: <defaults>
</compile_context>

<pallas_src>
import math
import functools

import jax
import jax.numpy as jnp
import numpy as np
from jax import lax
from jax.experimental import pallas as pl
from jax.experimental.pallas import tpu as pltpu


def _round_up(x, m):
    return (x + m - 1) // m * m


def _attention_kernel(vl_smem, vl_ref, q_ref, k_ref, v_ref, o_ref,
                      qs_sc, m_sc, l_sc, acc_sc, *, scale, tk_tile, bblk):
    """One grid step == (batch block b, query tile q, kv tile kv).

    vl_smem : SMEM (B_p,)          int32  -- valid length per batch row
    vl_ref  : VMEM (bblk, 1, 1)    int32  -- same lengths, vector form
    q_ref   : VMEM (bblk, tq, d)   input dtype
    k_ref   : VMEM (bblk, tk, d)   input dtype
    v_ref   : VMEM (bblk, tk, dv)  input dtype
    o_ref   : VMEM (bblk, tq, dv)  output dtype
    qs_sc   : VMEM (bblk, tq, d)   input dtype -- Q * 1/sqrt(d), hoisted
    m_sc    : VMEM (bblk, tq, 1)   f32    -- running max
    l_sc    : VMEM (bblk, tq, 1)   f32    -- running denominator
    acc_sc  : VMEM (bblk, tq, dv)  f32    -- output accumulator
    """
    b = pl.program_id(0)
    kv = pl.program_id(2)

    @pl.when(kv == 0)
    def _init():
        m_sc[...] = jnp.full_like(m_sc, -jnp.inf)
        l_sc[...] = jnp.zeros_like(l_sc)
        acc_sc[...] = jnp.zeros_like(acc_sc)
        # Fold 1/sqrt(d) into Q once per (batch, query) block instead of once
        # per kv step.
        qs_sc[...] = q_ref[...] * jnp.asarray(scale, dtype=q_ref.dtype)

    # Max valid length over this batch block (cheap scalar reads from SMEM).
    base = b * bblk
    max_len = vl_smem[base]
    for r in range(1, bblk):
        max_len = jnp.maximum(max_len, vl_smem[base + r])

    kv_start = kv * tk_tile

    # Skip kv tiles that are entirely masked for every row of the block
    # (their probabilities underflow to exactly 0, so skipping is exact).
    # Tile 0 is always processed so l_sc stays > 0 even when max_len == 0.
    @pl.when(kv_start < jnp.maximum(max_len, 1))
    def _compute():
        qs = qs_sc[...]
        k = k_ref[...]
        v = v_ref[...]

        # scores: contract the last dims of Q and K directly (no K transpose),
        # batched over the leading dim, f32 accumulation on the MXU.
        s = lax.dot_general(
            qs, k,
            dimension_numbers=(((2,), (2,)), ((0,), (0,))),
            preferred_element_type=jnp.float32)           # (bblk, tq, tk) f32

        # d2l sequence_mask semantics: key positions >= valid_len -> -1e6.
        # Built as a small (bblk, 1, tk) additive bias -> one add on s.
        col = lax.broadcasted_iota(jnp.int32, (bblk, 1, tk_tile), 2) + kv_start
        bias = jnp.where(col < vl_ref[...], jnp.float32(0.0),
                         jnp.float32(-1000000.0))
        s = s + bias

        # Online-softmax (flash style) update.
        m_prev = m_sc[...]
        m_new = jnp.maximum(m_prev, jnp.max(s, axis=-1, keepdims=True))
        alpha = jnp.exp(m_prev - m_new)
        p = jnp.exp(s - m_new)                            # (bblk, tq, tk) f32
        l_sc[...] = alpha * l_sc[...] + jnp.sum(p, axis=-1, keepdims=True)
        pv = lax.dot_general(
            p.astype(v.dtype), v,
            dimension_numbers=(((2,), (1,)), ((0,), (0,))),
            preferred_element_type=jnp.float32)           # (bblk, tq, dv) f32
        acc_sc[...] = alpha * acc_sc[...] + pv
        m_sc[...] = m_new

    @pl.when(kv == pl.num_programs(2) - 1)
    def _finalize():
        # Exact divide on the small (tq, dv) finalize tile: negligible cost,
        # keeps tight numerics.
        o_ref[...] = (acc_sc[...] / l_sc[...]).astype(o_ref.dtype)


def dot_product_attention(queries, keys, values, valid_lens=None,
                          *, bblk=8, tq_tile=256, tk_tile=256):
    """Pallas implementation of DotProductAttention.forward (eval mode).

    queries (B, Tq, d), keys (B, Tk, d), values (B, Tk, dv);
    valid_lens: None or 1-D int array (B,).  Returns (B, Tq, dv).
    """
    B, Tq, d = queries.shape
    _, Tk, dv = values.shape
    out_dtype = queries.dtype
    scale = 1.0 / math.sqrt(d)

    if valid_lens is None:
        valid_lens = jnp.full((B,), Tk, dtype=jnp.int32)
    valid_lens = valid_lens.astype(jnp.int32)

    # Effective tile sizes.  The second-to-last block dims (Tq / Tk tiles)
    # must be sublane multiples; d / dv stay unpadded (full-dim blocks are
    # always legal and avoid doubling HBM traffic for small head dims).
    sub = 16 if jnp.dtype(out_dtype).itemsize == 2 else 8
    bblk_e = max(1, min(bblk, B))
    tq_e = min(tq_tile, _round_up(Tq, sub))
    tk_e = min(tk_tile, _round_up(Tk, sub))

    B_p = _round_up(B, bblk_e)
    Tq_p = _round_up(Tq, tq_e)
    Tk_p = _round_up(Tk, tk_e)

    q_p, k_p, v_p = queries, keys, values
    if B_p != B or Tq_p != Tq:
        q_p = jnp.pad(queries, ((0, B_p - B), (0, Tq_p - Tq), (0, 0)))
    if B_p != B or Tk_p != Tk:
        k_p = jnp.pad(keys, ((0, B_p - B), (0, Tk_p - Tk), (0, 0)))
        v_p = jnp.pad(values, ((0, B_p - B), (0, Tk_p - Tk), (0, 0)))

    vl_p = valid_lens
    if B_p != B:
        vl_p = jnp.pad(valid_lens, (0, B_p - B))    # padded rows masked out
    vl_smem = vl_p                                   # (B_p,)  scalar prefetch
    vl_vmem = vl_p.reshape(B_p, 1, 1)                # (B_p,1,1) vector mask

    nb, nq, nk = B_p // bblk_e, Tq_p // tq_e, Tk_p // tk_e

    kernel = functools.partial(_attention_kernel, scale=scale,
                               tk_tile=tk_e, bblk=bblk_e)

    grid_spec = pltpu.PrefetchScalarGridSpec(
        num_scalar_prefetch=1,
        grid=(nb, nq, nk),
        in_specs=[
            pl.BlockSpec((bblk_e, 1, 1), lambda b, q, kv, vl: (b, 0, 0)),
            pl.BlockSpec((bblk_e, tq_e, d), lambda b, q, kv, vl: (b, q, 0)),
            pl.BlockSpec((bblk_e, tk_e, d), lambda b, q, kv, vl: (b, kv, 0)),
            pl.BlockSpec((bblk_e, tk_e, dv), lambda b, q, kv, vl: (b, kv, 0)),
        ],
        out_specs=pl.BlockSpec((bblk_e, tq_e, dv),
                               lambda b, q, kv, vl: (b, q, 0)),
        scratch_shapes=[
            pltpu.VMEM((bblk_e, tq_e, d), out_dtype),      # scaled Q
            pltpu.VMEM((bblk_e, tq_e, 1), jnp.float32),    # running max
            pltpu.VMEM((bblk_e, tq_e, 1), jnp.float32),    # running denom
            pltpu.VMEM((bblk_e, tq_e, dv), jnp.float32),   # output accumulator
        ],
    )

    # VMEM budget: double-buffered blocks + scratch + f32 score/prob temps,
    # with 2x headroom; capped at 64 MiB so the setting is legal on v7x.
    esz = jnp.dtype(out_dtype).itemsize
    est = (2 * bblk_e * tq_e * d * esz          # Q (double buffered)
           + 2 * bblk_e * tk_e * d * esz        # K
           + 2 * bblk_e * tk_e * dv * esz       # V
           + 2 * bblk_e * tq_e * dv * esz       # out
           + bblk_e * tq_e * d * esz            # scaled-Q scratch
           + bblk_e * tq_e * dv * 4             # f32 accumulator
           + 2 * bblk_e * tq_e * 4              # m, l
           + 4 * bblk_e * tq_e * tk_e * 4)      # live f32 score/prob temps
    vmem_limit = int(min(max(2 * est, 32 * 1024 * 1024), 64 * 1024 * 1024))

    out = pl.pallas_call(
        kernel,
        grid_spec=grid_spec,
        out_shape=jax.ShapeDtypeStruct((B_p, Tq_p, dv), out_dtype),
        compiler_params=pltpu.CompilerParams(
            dimension_semantics=("parallel", "parallel", "arbitrary"),
            vmem_limit_bytes=vmem_limit),
    )(vl_smem, vl_vmem, q_p, k_p, v_p)

    return out[:B, :Tq, :]


def _reference(queries, keys, values, valid_lens):
    """Pure-JAX reference replicating the PyTorch masked_softmax path."""
    d = queries.shape[-1]
    scores = jnp.einsum("bqd,bkd->bqk", queries, keys) / math.sqrt(d)
    Tk = scores.shape[-1]
    col = jnp.arange(Tk)[None, None, :]
    vl = valid_lens[:, None, None]
    scores = jnp.where(col < vl, scores, -1000000.0)
    attn = jax.nn.softmax(scores, axis=-1)
    return jnp.einsum("bqk,bkv->bqv", attn, values)


if __name__ == "__main__":
    # --- Test 1: exact shapes from the d2l 10.3 script ---------------------
    # queries (2,1,2), keys (2,10,2), values (2,10,4), valid_lens [2, 6]
    key = jax.random.PRNGKey(0)
    B, Tq, Tk, d, dv = 2, 1, 10, 2, 4

    queries = jax.random.normal(key, (B, Tq, d), dtype=jnp.float32)
    keys = jnp.ones((B, Tk, d), dtype=jnp.float32)
    values = jnp.tile(
        jnp.arange(Tk * dv, dtype=jnp.float32).reshape(1, Tk, dv), (B, 1, 1))
    valid_lens = jnp.array([2, 6], dtype=jnp.int32)

    out = dot_product_attention(queries, keys, values, valid_lens)
    out = jax.block_until_ready(out)
    ref = _reference(queries, keys, values, valid_lens)
    np.testing.assert_allclose(np.asarray(out), np.asarray(ref),
                               rtol=1e-5, atol=1e-5)

    # --- Test 2: larger ragged case exercising q/kv tiling + tile skipping --
    k0, k1, k2 = jax.random.split(jax.random.PRNGKey(0), 3)
    B2, Tq2, Tk2, d2, dv2 = 3, 300, 300, 64, 32
    q2 = jax.random.normal(k0, (B2, Tq2, d2), dtype=jnp.float32)
    kk2 = jax.random.normal(k1, (B2, Tk2, d2), dtype=jnp.float32)
    v2 = jax.random.normal(k2, (B2, Tk2, dv2), dtype=jnp.float32)
    vl2 = jnp.array([3, 170, 300], dtype=jnp.int32)

    out2 = dot_product_attention(q2, kk2, v2, vl2)
    out2 = jax.block_until_ready(out2)
    ref2 = _reference(q2, kk2, v2, vl2)
    np.testing.assert_allclose(np.asarray(out2), np.asarray(ref2),
                               rtol=1e-4, atol=1e-5)

    print("KERNEL_OK")
</pallas_src>

<mosaic_0001>
module attributes {stable_mosaic.version = 11 : i64} {
  func.func @_attention_kernel(%arg0: i32, %arg1: i32, %arg2: i32, %arg3: memref<2xi32, #tpu.memory_space<smem>>, %arg4: memref<2x1x1xi32, #tpu.memory_space<vmem>>, %arg5: memref<2x8x2xf32, #tpu.memory_space<vmem>>, %arg6: memref<2x16x2xf32, #tpu.memory_space<vmem>>, %arg7: memref<2x16x4xf32, #tpu.memory_space<vmem>>, %arg8: memref<2x8x4xf32, #tpu.memory_space<vmem>>, %arg9: memref<2x8x2xf32, #tpu.memory_space<vmem>>, %arg10: memref<2x8x1xf32, #tpu.memory_space<vmem>>, %arg11: memref<2x8x1xf32, #tpu.memory_space<vmem>>, %arg12: memref<2x8x4xf32, #tpu.memory_space<vmem>>) attributes {dimension_semantics = [#tpu.dimension_semantics<parallel>, #tpu.dimension_semantics<parallel>, #tpu.dimension_semantics<arbitrary>], iteration_bounds = array<i64: 1, 1, 1>, scalar_prefetch = 1 : i64, scratch_operands = 4 : i64, tpu.core_type = #tpu.core_type<tc>, window_params = [{transform_indices = @transform_0, window_bounds = array<i64: 2, 1, 1>}, {transform_indices = @transform_1, window_bounds = array<i64: 2, 8, 2>}, {transform_indices = @transform_2, window_bounds = array<i64: 2, 16, 2>}, {transform_indices = @transform_3, window_bounds = array<i64: 2, 16, 4>}, {transform_indices = @transform_4, window_bounds = array<i64: 2, 8, 4>}]} {
    %c0_i32 = arith.constant 0 : i32
    %0 = arith.cmpi eq, %arg2, %c0_i32 : i32
    %1 = arith.extui %0 : i1 to i32
    %c0_i32_0 = arith.constant 0 : i32
    %2 = arith.cmpi ne, %1, %c0_i32_0 : i32
    scf.if %2 {
      %cst = arith.constant 0xFF800000 : f32
      %18 = vector.broadcast %cst : f32 to vector<2x8x1xf32>
      %c0 = arith.constant 0 : index
      %c0_5 = arith.constant 0 : index
      %c0_6 = arith.constant 0 : index
      %19 = vector.load %arg10[%c0, %c0_5, %c0_6] : memref<2x8x1xf32, #tpu.memory_space<vmem>>, vector<2x8x1xf32>
      tpu.vector_store %arg10[%c0, %c0_5, %c0_6], %18 {strides = array<i32>} : memref<2x8x1xf32, #tpu.memory_space<vmem>>, vector<2x8x1xf32>,
      %cst_7 = arith.constant 0.000000e+00 : f32
      %20 = vector.broadcast %cst_7 : f32 to vector<2x8x1xf32>
      %c0_8 = arith.constant 0 : index
      %c0_9 = arith.constant 0 : index
      %c0_10 = arith.constant 0 : index
      %21 = vector.load %arg11[%c0_8, %c0_9, %c0_10] : memref<2x8x1xf32, #tpu.memory_space<vmem>>, vector<2x8x1xf32>
      tpu.vector_store %arg11[%c0_8, %c0_9, %c0_10], %20 {strides = array<i32>} : memref<2x8x1xf32, #tpu.memory_space<vmem>>, vector<2x8x1xf32>,
      %cst_11 = arith.constant 0.000000e+00 : f32
      %22 = vector.broadcast %cst_11 : f32 to vector<2x8x4xf32>
      %c0_12 = arith.constant 0 : index
      %c0_13 = arith.constant 0 : index
      %c0_14 = arith.constant 0 : index
      %23 = vector.load %arg12[%c0_12, %c0_13, %c0_14] : memref<2x8x4xf32, #tpu.memory_space<vmem>>, vector<2x8x4xf32>
      tpu.vector_store %arg12[%c0_12, %c0_13, %c0_14], %22 {strides = array<i32>} : memref<2x8x4xf32, #tpu.memory_space<vmem>>, vector<2x8x4xf32>,
      %c0_15 = arith.constant 0 : index
      %c0_16 = arith.constant 0 : index
      %c0_17 = arith.constant 0 : index
      %24 = vector.load %arg5[%c0_15, %c0_16, %c0_17] : memref<2x8x2xf32, #tpu.memory_space<vmem>>, vector<2x8x2xf32>
      %cst_18 = arith.constant 0.707106769 : f32
      %25 = vector.broadcast %cst_18 : f32 to vector<2x8x2xf32>
      %26 = arith.mulf %24, %25 : vector<2x8x2xf32>
      %c0_19 = arith.constant 0 : index
      %c0_20 = arith.constant 0 : index
      %c0_21 = arith.constant 0 : index
      %27 = vector.load %arg9[%c0_19, %c0_20, %c0_21] : memref<2x8x2xf32, #tpu.memory_space<vmem>>, vector<2x8x2xf32>
      tpu.vector_store %arg9[%c0_19, %c0_20, %c0_21], %26 {strides = array<i32>} : memref<2x8x2xf32, #tpu.memory_space<vmem>>, vector<2x8x2xf32>,
    } else {
    }
    %c2_i32 = arith.constant 2 : i32
    %3 = arith.muli %arg0, %c2_i32 : i32
    %4 = arith.index_cast %3 : i32 to index
    %5 = memref.load %arg3[%4] : memref<2xi32, #tpu.memory_space<smem>>
    %c1_i32 = arith.constant 1 : i32
    %6 = arith.addi %3, %c1_i32 : i32
    %7 = arith.index_cast %6 : i32 to index
    %8 = memref.load %arg3[%7] : memref<2xi32, #tpu.memory_space<smem>>
    %9 = arith.maxsi %5, %8 : i32
    %c16_i32 = arith.constant 16 : i32
    %10 = arith.muli %arg2, %c16_i32 : i32
    %c1_i32_1 = arith.constant 1 : i32
    %11 = arith.maxsi %9, %c1_i32_1 : i32
    %12 = arith.cmpi slt, %10, %11 : i32
    %13 = arith.extui %12 : i1 to i32
    %c0_i32_2 = arith.constant 0 : i32
    %14 = arith.cmpi ne, %13, %c0_i32_2 : i32
    scf.if %14 {
      %c0 = arith.constant 0 : index
      %c0_5 = arith.constant 0 : index
      %c0_6 = arith.constant 0 : index
      %18 = vector.load %arg9[%c0, %c0_5, %c0_6] : memref<2x8x2xf32, #tpu.memory_space<vmem>>, vector<2x8x2xf32>
      %c0_7 = arith.constant 0 : index
      %c0_8 = arith.constant 0 : index
      %c0_9 = arith.constant 0 : index
      %19 = vector.load %arg6[%c0_7, %c0_8, %c0_9] : memref<2x16x2xf32, #tpu.memory_space<vmem>>, vector<2x16x2xf32>
      %c0_10 = arith.constant 0 : index
      %c0_11 = arith.constant 0 : index
      %c0_12 = arith.constant 0 : index
      %20 = vector.load %arg7[%c0_10, %c0_11, %c0_12] : memref<2x16x4xf32, #tpu.memory_space<vmem>>, vector<2x16x4xf32>
      %cst = arith.constant dense<0.000000e+00> : vector<2x8x16xf32>
      %21 = tpu.matmul %18, %19, %cst {dimension_numbers = #tpu.dot_dimension_numbers<[2], [2], [1], [1], [0, 0, 0, 1, 1, 1], [0], [0]>} : vector<2x8x2xf32>, vector<2x16x2xf32>, vector<2x8x16xf32> -> vector<2x8x16xf32>
      %22 = tpu.iota {dimensions = array<i32: 2>} : vector<2x1x16xi32>
      %23 = vector.broadcast %10 : i32 to vector<2x1x16xi32>
      %24 = arith.addi %22, %23 : vector<2x1x16xi32>
      %c0_13 = arith.constant 0 : index
      %c0_14 = arith.constant 0 : index
      %c0_15 = arith.constant 0 : index
      %25 = vector.load %arg4[%c0_13, %c0_14, %c0_15] : memref<2x1x1xi32, #tpu.memory_space<vmem>>, vector<2x1x1xi32>
      %26 = vector.broadcast %25 : vector<2x1x1xi32> to vector<2x1x16xi32>
      %27 = arith.cmpi slt, %24, %26 : vector<2x1x16xi32>
      %cst_16 = arith.constant 0.000000e+00 : f32
      %cst_17 = arith.constant -1.000000e+06 : f32
      %28 = vector.broadcast %cst_16 : f32 to vector<2x1x16xf32>
      %29 = vector.broadcast %cst_17 : f32 to vector<2x1x16xf32>
      %30 = arith.select %27, %28, %29 : vector<2x1x16xi1>, vector<2x1x16xf32>
      %31 = vector.broadcast %30 : vector<2x1x16xf32> to vector<2x8x16xf32>
      %32 = arith.addf %21, %31 : vector<2x8x16xf32>
      %c0_18 = arith.constant 0 : index
      %c0_19 = arith.constant 0 : index
      %c0_20 = arith.constant 0 : index
      %33 = vector.load %arg10[%c0_18, %c0_19, %c0_20] : memref<2x8x1xf32, #tpu.memory_space<vmem>>, vector<2x8x1xf32>
      %cst_21 = arith.constant dense<0xFF800000> : vector<2x8xf32>
      %34 = vector.multi_reduction <maximumf>, %32, %cst_21 [2] : vector<2x8x16xf32> to vector<2x8xf32>
      %35 = vector.shape_cast %34 : vector<2x8xf32> to vector<2x8x1xf32>
      %36 = arith.maximumf %33, %35 : vector<2x8x1xf32>
      %37 = arith.subf %33, %36 : vector<2x8x1xf32>
      %38 = math.exp %37 : vector<2x8x1xf32>
      %39 = vector.broadcast %36 : vector<2x8x1xf32> to vector<2x8x16xf32>
      %40 = arith.subf %32, %39 : vector<2x8x16xf32>
      %41 = math.exp %40 : vector<2x8x16xf32>
      %c0_22 = arith.constant 0 : index
      %c0_23 = arith.constant 0 : index
      %c0_24 = arith.constant 0 : index
      %42 = vector.load %arg11[%c0_22, %c0_23, %c0_24] : memref<2x8x1xf32, #tpu.memory_space<vmem>>, vector<2x8x1xf32>
      %43 = arith.mulf %38, %42 : vector<2x8x1xf32>
      %cst_25 = arith.constant dense<0.000000e+00> : vector<2x8xf32>
      %44 = vector.multi_reduction <add>, %41, %cst_25 [2] : vector<2x8x16xf32> to vector<2x8xf32>
      %45 = vector.shape_cast %44 : vector<2x8xf32> to vector<2x8x1xf32>
      %46 = arith.addf %43, %45 : vector<2x8x1xf32>
      %c0_26 = arith.constant 0 : index
      %c0_27 = arith.constant 0 : index
      %c0_28 = arith.constant 0 : index
      %47 = vector.load %arg11[%c0_26, %c0_27, %c0_28] : memref<2x8x1xf32, #tpu.memory_space<vmem>>, vector<2x8x1xf32>
      tpu.vector_store %arg11[%c0_26, %c0_27, %c0_28], %46 {strides = array<i32>} : memref<2x8x1xf32, #tpu.memory_space<vmem>>, vector<2x8x1xf32>,
      %cst_29 = arith.constant dense<0.000000e+00> : vector<2x8x4xf32>
      %48 = tpu.matmul %41, %20, %cst_29 {dimension_numbers = #tpu.dot_dimension_numbers<[2], [1], [1], [2], [0, 0, 0, 1, 1, 2], [0], [0]>} : vector<2x8x16xf32>, vector<2x16x4xf32>, vector<2x8x4xf32> -> vector<2x8x4xf32>
      %c0_30 = arith.constant 0 : index
      %c0_31 = arith.constant 0 : index
      %c0_32 = arith.constant 0 : index
      %49 = vector.load %arg12[%c0_30, %c0_31, %c0_32] : memref<2x8x4xf32, #tpu.memory_space<vmem>>, vector<2x8x4xf32>
      %50 = vector.broadcast %38 : vector<2x8x1xf32> to vector<2x8x4xf32>
      %51 = arith.mulf %50, %49 : vector<2x8x4xf32>
      %52 = arith.addf %51, %48 : vector<2x8x4xf32>
      %c0_33 = arith.constant 0 : index
      %c0_34 = arith.constant 0 : index
      %c0_35 = arith.constant 0 : index
      %53 = vector.load %arg12[%c0_33, %c0_34, %c0_35] : memref<2x8x4xf32, #tpu.memory_space<vmem>>, vector<2x8x4xf32>
      tpu.vector_store %arg12[%c0_33, %c0_34, %c0_35], %52 {strides = array<i32>} : memref<2x8x4xf32, #tpu.memory_space<vmem>>, vector<2x8x4xf32>,
      %c0_36 = arith.constant 0 : index
      %c0_37 = arith.constant 0 : index
      %c0_38 = arith.constant 0 : index
      %54 = vector.load %arg10[%c0_36, %c0_37, %c0_38] : memref<2x8x1xf32, #tpu.memory_space<vmem>>, vector<2x8x1xf32>
      tpu.vector_store %arg10[%c0_36, %c0_37, %c0_38], %36 {strides = array<i32>} : memref<2x8x1xf32, #tpu.memory_space<vmem>>, vector<2x8x1xf32>,
    } else {
    }
    %c0_i32_3 = arith.constant 0 : i32
    %15 = arith.cmpi eq, %arg2, %c0_i32_3 : i32
    %16 = arith.extui %15 : i1 to i32
    %c0_i32_4 = arith.constant 0 : i32
    %17 = arith.cmpi ne, %16, %c0_i32_4 : i32
    scf.if %17 {
      %c0 = arith.constant 0 : index
      %c0_5 = arith.constant 0 : index
      %c0_6 = arith.constant 0 : index
      %18 = vector.load %arg12[%c0, %c0_5, %c0_6] : memref<2x8x4xf32, #tpu.memory_space<vmem>>, vector<2x8x4xf32>
      %c0_7 = arith.constant 0 : index
      %c0_8 = arith.constant 0 : index
      %c0_9 = arith.constant 0 : index
      %19 = vector.load %arg11[%c0_7, %c0_8, %c0_9] : memref<2x8x1xf32, #tpu.memory_space<vmem>>, vector<2x8x1xf32>
      %20 = vector.broadcast %19 : vector<2x8x1xf32> to vector<2x8x4xf32>
      %21 = arith.divf %18, %20 : vector<2x8x4xf32>
      %c0_10 = arith.constant 0 : index
      %c0_11 = arith.constant 0 : index
      %c0_12 = arith.constant 0 : index
      %22 = vector.load %arg8[%c0_10, %c0_11, %c0_12] : memref<2x8x4xf32, #tpu.memory_space<vmem>>, vector<2x8x4xf32>
      tpu.vector_store %arg8[%c0_10, %c0_11, %c0_12], %21 {strides = array<i32>} : memref<2x8x4xf32, #tpu.memory_space<vmem>>, vector<2x8x4xf32>,
    } else {
    }
    return
  }
  func.func @transform_0(%arg0: i32, %arg1: i32, %arg2: i32, %arg3: memref<2xi32, #tpu.memory_space<smem>>) -> (i32, i32, i32) {
    %c0_i32 = arith.constant 0 : i32
    %c0_i32_0 = arith.constant 0 : i32
    %c0_i32_1 = arith.constant 0 : i32
    return %arg0, %c0_i32, %c0_i32_0 : i32, i32, i32
  }
  func.func @transform_1(%arg0: i32, %arg1: i32, %arg2: i32, %arg3: memref<2xi32, #tpu.memory_space<smem>>) -> (i32, i32, i32) {
    %c0_i32 = arith.constant 0 : i32
    %c0_i32_0 = arith.constant 0 : i32
    return %arg0, %arg1, %c0_i32 : i32, i32, i32
  }
  func.func @transform_2(%arg0: i32, %arg1: i32, %arg2: i32, %arg3: memref<2xi32, #tpu.memory_space<smem>>) -> (i32, i32, i32) {
    %c0_i32 = arith.constant 0 : i32
    %c0_i32_0 = arith.constant 0 : i32
    return %arg0, %arg2, %c0_i32 : i32, i32, i32
  }
  func.func @transform_3(%arg0: i32, %arg1: i32, %arg2: i32, %arg3: memref<2xi32, #tpu.memory_space<smem>>) -> (i32, i32, i32) {
    %c0_i32 = arith.constant 0 : i32
    %c0_i32_0 = arith.constant 0 : i32
    return %arg0, %arg2, %c0_i32 : i32, i32, i32
  }
  func.func @transform_4(%arg0: i32, %arg1: i32, %arg2: i32, %arg3: memref<2xi32, #tpu.memory_space<smem>>) -> (i32, i32, i32) {
    %c0_i32 = arith.constant 0 : i32
    %c0_i32_0 = arith.constant 0 : i32
    return %arg0, %arg1, %c0_i32 : i32, i32, i32
  }
}

</mosaic_0001>

<bundles_post_ra>
// kernel: tpu_custom_call.1
= control target key start
LH: loop header
LB: loop body
LE: loop exit
PB: predicated region body
PF: predicated region fallthrough
CT: control target
= control target key end

     0   :  { %s366_s21 = smov [#allocation7]   ;;  %s478_s0 = inlined_call_operand.vmem [shape: s32[2], index: 0, kind: input, shape index: {}]   ;;  %s479_s1 = inlined_call_operand.vmem [shape: s32[2,1,1], index: 1, kind: input, shape index: {}]   ;;  %s480_s2 = inlined_call_operand.vmem [shape: f32[2,8,2], index: 2, kind: input, shape index: {}]   ;;  %s481_s3 = inlined_call_operand.vmem [shape: f32[2,16,2], index: 3, kind: input, shape index: {}]   ;;  %s482_s4 = inlined_call_operand.vmem [shape: f32[2,16,4], index: 4, kind: input, shape index: {}]   ;;  %s483_s5 = inlined_call_operand.vmem [shape: f32[2,8,4], index: 5, kind: output, shape index: {}]  }
   0x1   :  { %s11_s20 = sshll.u32 %s478_s0, 4  ;;  %s12_s20 = int_to_ptr.vmem [resolvable:$true] %s11_s20 }
   0x2   :  { %14 = dma.vmem_to_smem %s12_s20, 16, %s366_s21, [#allocation6] }
   0x3   :  { %364 = dma.done.wait [#allocation6], 16 }
   0x4   :  { %365 = vsyncadd [#allocation6], 4294967280 }
   0x5   :  { %17 = sfence }
   0x6   :  { %v38_v0 = vld [vmem:[%s480_s2] sm:$0xff]  ;;  %v39_v1 = vld [vmem:[%s480_s2 + $0x8] sm:$0xff]  ;;  %vm42_vm0 = vcmask 15360   ;;  %v63_v5 = vld [vmem:[%s481_s3 + $0x18] sm:$0xff]  ;;  %v367_v6 = vmov 0   ;;  %v68_v14 = vlaneseq  ;;  %vm147_vm2 = vcmask 130048  }
   0x7   :  { %v61_v2 = vld [vmem:[%s481_s3 + $0x8] sm:$0xff]  ;;  %v40_v3 = vmul.f32 0.70710677, %v38_v0  ;;  %v41_v4 = vmul.f32 0.70710677, %v39_v1  ;;  %337 = vset.pattern.permute.xlu0 %v367_v6  ;;  %320 = vmatpush.xpose.msk.msra.mxu1 %vm42_vm0, %v63_v5  ;;  %v60_v7 = vld [vmem:[%s481_s3] sm:$0xff] }
   0x8   :  { %317 = vmatpush.xpose.msk.msra.mxu0 %vm42_vm0, %v61_v2  ;;  %v72_v8 = vld [vmem:[%s479_s1] sm:$0x1]  ;;  %338 = vset.pattern.permute.xlu2 %v367_v6  ;;  %v62_v9 = vld [vmem:[%s481_s3 + $0x10] sm:$0xff]  ;;  %v73_v10 = vld [vmem:[%s479_s1 + $0x1] sm:$0x1]  ;;  %v69_v16 = vand.u32 127, %v68_v14 }
   0x9   :  { %43 = vst.msk [vmem:[#allocation2] sm:$0xff] %vm42_vm0, %v40_v3  ;;  %75 = vperm.xlu0 %337, %v72_v8   ;;  %339 = vset.pattern.permute.xlu1 %v367_v6  ;;  %v368_v19 = vmov -1000000.0   ;;  %vm30_vm4 = vcmask 7168   ;;  %v369_v28 = vmov -inf   ;;  %v370_v29 = vmov 0.0  }
   0xa   :  { %44 = vst.msk [vmem:[#allocation2 + $0x8] sm:$0xff] %vm42_vm0, %v41_v4  ;;  %v65_v38 = vld [vmem:[%s482_s4 + $0x8] sm:$0xff]  ;;  %v64_v39 = vld [vmem:[%s482_s4] sm:$0xff]  ;;  %v67_v40 = vld [vmem:[%s482_s4 + $0x18] sm:$0xff]  ;;  %vm35_vm5 = vcmask 31744  }
   0xb   :  { %321 = vmatpush.xpose.msk.msra.mxu1 %vm42_vm0, %v62_v9  ;;  %31 = vst.msk [vmem:[#allocation3] sm:$0xff] %vm30_vm4, %v369_v28  ;;  %210 = vmatpush.msra.mxu2 %v65_v38  ;;  %v66_v41 = vld [vmem:[%s482_s4 + $0x10] sm:$0xff] }
   0xc   :  { %318 = vmatpush.xpose.msk.msra.mxu0 %vm42_vm0, %v60_v7  ;;  %32 = vst.msk [vmem:[#allocation3 + $0x8] sm:$0xff] %vm30_vm4, %v369_v28  ;;  %233 = vmatpush.msra.mxu3 %v67_v40 }
   0xd   :  { %33 = vst.msk [vmem:[#allocation4] sm:$0xff] %vm30_vm4, %v370_v29  ;;  %211 = vmatpush.msra.mxu2 %v64_v39 }
   0xe   :  { %34 = vst.msk [vmem:[#allocation4 + $0x8] sm:$0xff] %vm30_vm4, %v370_v29  ;;  %234 = vmatpush.msra.mxu3 %v66_v41 }
   0xf   :  { %36 = vst.msk [vmem:[#allocation5] sm:$0xff] %vm35_vm5, %v370_v29 }
  0x10   :  { %v58_v11 = vld [vmem:[#allocation2] sm:$0xff]  ;;  %37 = vst.msk [vmem:[#allocation5 + $0x8] sm:$0xff] %vm35_vm5, %v370_v29 }
  0x11   :  { %319 = vmatmul.msk.f32.vlgmr.msra.gmra.mxu0 %vm42_vm0, %v58_v11  ;;  %v59_v12 = vld [vmem:[#allocation2 + $0x8] sm:$0xff]  ;;  %79 = vperm.xlu0 %337, %v73_v10  }
  0x12   :  { %322 = vmatmul.msk.f32.vlgmr.msra.gmra.mxu1 %vm42_vm0, %v59_v12  ;;  %v145_v30 = vld [vmem:[#allocation3] sm:$0xff] }
  0x13   :  { %v146_v34 = vld [vmem:[#allocation3 + $0x8] sm:$0xff] }
  0x14   :  { %v178_v55 = vld [vmem:[#allocation4] sm:$0xff] }
  0x15   :  { %v179_v60 = vld [vmem:[#allocation4 + $0x8] sm:$0xff] }
  0x16   :  { %v239_v3 = vld [vmem:[#allocation5] sm:$0xff] }
  0x17   :  { %v240_v14 = vld [vmem:[#allocation5 + $0x8] sm:$0xff] }
  0x7b   :  { %v76_v13 = vpop.permute.xlu0 %75 }
  0x7c   :  { %v77_v15 = vperm.slane %v76_v13, 0 }
  0x7e   :  { %vm82_vm1 = vcmp.lt.s32.totalorder %v69_v16, %v77_v15 }
  0x7f   :  { %v84_v20 = vsel %vm82_vm1, 0.0, %v368_v19 }
  0x83   :  { %v80_v17 = vpop.permute.xlu0 %79 }
  0x84   :  { %v81_v18 = vperm.slane %v80_v17, 0 }
  0x86   :  { %vm83_vm3 = vcmp.lt.s32.totalorder %v69_v16, %v81_v18 }
  0x87   :  { %v85_v24 = vsel %vm83_vm3, 0.0, %v368_v19 }
  0x8e   :  { %v113_v21 = vpop.f32.mrf.mxu0 }
  0x8f   :  { %v114_v22 = vadd.f32 %v113_v21, %v84_v20  ;;  %v142_v25 = vpop.f32.mrf.mxu1 }
  0x90   :  { %v143_v26 = vadd.f32 %v142_v25, %v85_v24 }
  0x91   :  { %v148_v23 = vsel %vm147_vm2, %v114_v22, -inf }
  0x92   :  { %149 = vmax.xlane.f32.xlu1 %v148_v23  ;;  %v151_v27 = vsel %vm147_vm2, %v143_v26, -inf }
  0x9a   :  { %152 = vmax.xlane.f32.xlu1 %v151_v27 }
 0x105   :  { %v150_v31 = vpop.xlane.xlu1 %149 }
 0x106   :  { %v154_v32 = vmax.f32 %v145_v30, %v150_v31 }
 0x108   :  { %v156_v33 = vsub.f32 %v145_v30, %v154_v32  ;;  %258 = vst.msk [vmem:[#allocation3] sm:$0xff] %vm30_vm4, %v154_v32  ;;  %164 = vperm.xlu2 %338, %v154_v32  }
 0x10a   :  { %v158_v52 = vmul.f32 1.442695, %v156_v33 }
 0x10d   :  { %v153_v35 = vpop.xlane.xlu1 %152 }
 0x10e   :  { %v155_v36 = vmax.f32 %v146_v34, %v153_v35 }
 0x110   :  { %v157_v37 = vsub.f32 %v146_v34, %v155_v36  ;;  %259 = vst.msk [vmem:[#allocation3 + $0x8] sm:$0xff] %vm30_vm4, %v155_v36  ;;  %169 = vperm.xlu2 %338, %v155_v36  }
 0x112   :  { %v160_v53 = vmul.f32 1.442695, %v157_v37 }
 0x162   :  { %v165_v42 = vpop.permute.xlu2 %164 }
 0x163   :  { %v172_v43 = vsub.f32 %v114_v22, %v165_v42 }
 0x165   :  { %v174_v44 = vmul.f32 1.442695, %v172_v43 }
 0x167   :  { %340 = vpow2.f32 %v174_v44 }
 0x16a   :  { %v170_v45 = vpop.permute.xlu2 %169 }
 0x16b   :  { %v173_v46 = vsub.f32 %v143_v26, %v170_v45 }
 0x16d   :  { %v341_v47 = vpop.eup %340  ;;  %v176_v48 = vmul.f32 1.442695, %v173_v46 }
 0x16e   :  { %323 = vmatmul.msk.f32.vlgmr.msra.gmra.mxu2 %vm147_vm2, %v341_v47  ;;  %v182_v49 = vsel %vm147_vm2, %v341_v47, 0.0 }
 0x16f   :  { %342 = vpow2.f32 %v176_v48  ;;  %183 = vadd.xlane.f32.xlu0 %v182_v49 }
 0x170   :  { %344 = vpow2.f32 %v158_v52 }
 0x171   :  { %346 = vpow2.f32 %v160_v53 }
 0x175   :  { %v343_v50 = vpop.eup %342 }
 0x176   :  { %324 = vmatmul.msk.f32.vlgmr.msra.gmra.mxu3 %vm147_vm2, %v343_v50  ;;  %v185_v51 = vsel %vm147_vm2, %v343_v50, 0.0  ;;  %v345_v54 = vpop.eup %344 }
 0x177   :  { %186 = vadd.xlane.f32.xlu1 %v185_v51  ;;  %v180_v56 = vmul.f32 %v345_v54, %v178_v55  ;;  %v347_v59 = vpop.eup %346 }
 0x178   :  { %v181_v61 = vmul.f32 %v347_v59, %v179_v60 }
 0x1e2   :  { %v184_v57 = vpop.xlane.xlu0 %183 }
 0x1e3   :  { %v188_v58 = vadd.f32 %v184_v57, %v180_v56 }
 0x1e5   :  { %191 = vst.msk [vmem:[#allocation4] sm:$0xff] %vm30_vm4, %v188_v58 }
 0x1ea   :  { %v187_v62 = vpop.xlane.xlu1 %186 }
 0x1eb   :  { %v189_v63 = vadd.f32 %v187_v62, %v181_v61 }
 0x1ec   :  { %v265_v0 = vld [vmem:[#allocation4] sm:$0xff] }
 0x1ed   :  { %192 = vst.msk [vmem:[#allocation4 + $0x8] sm:$0xff] %vm30_vm4, %v189_v63  ;;  %269 = vperm.xlu2 %338, %v265_v0  }
 0x1f1   :  { %v213_v8 = vpop.f32.mrf.mxu2 }
 0x1f4   :  { %v266_v1 = vld [vmem:[#allocation4 + $0x8] sm:$0xff] }
 0x1f5   :  { %274 = vperm.xlu1 %339, %v266_v1   ;;  %243 = vperm.xlu2 %338, %v345_v54  }
 0x1f9   :  { %v236_v19 = vpop.f32.mrf.mxu3 }
 0x1fd   :  { %248 = vperm.xlu2 %338, %v347_v59  }
 0x247   :  { %v270_v2 = vpop.permute.xlu2 %269 }
 0x248   :  { %348 = vrcp.f32 %v270_v2  ;;  %v288_v13 = vand.u32 2147483648, %v270_v2  ;;  %vm282_vm7 = vweird.f32 %v270_v2  ;;  %v286_v15 = vand.u32 2147483647, %v270_v2 }
 0x24a   :  { %v289_v20 = vor.u32 1.1754944e-38, %v288_v13  ;;  %vm287_vm9 = vcmp.eq.f32.partialorder %v286_v15, 8.507059e+37 }
 0x24e   :  { %v349_v4 = vpop.eup %348 }
 0x24f   :  { %v278_v5 = vmul.f32 %v349_v4, %v270_v2  ;;  %v244_v6 = vpop.permute.xlu2 %243  ;;  %vm283_vm6 = vweird.f32 %v349_v4 }
 0x250   :  { %v251_v7 = vmul.f32 %v244_v6, %v239_v3  ;;  %vm284_vm8 = vmor %vm282_vm7, %vm283_vm6 }
 0x251   :  { %v279_v9 = vsub.f32 1.0, %v278_v5 }
 0x252   :  { %v253_v10 = vadd.f32 %v251_v7, %v213_v8 }
 0x253   :  { %v280_v11 = vmul.f32 %v349_v4, %v279_v9 }
 0x254   :  { %256 = vst.msk [vmem:[#allocation5] sm:$0xff] %vm35_vm5, %v253_v10 }
 0x255   :  { %v281_v12 = vadd.f32 %v349_v4, %v280_v11 }
 0x257   :  { %v249_v16 = vpop.permute.xlu2 %248  ;;  %v285_v17 = vsel %vm284_vm8, %v349_v4, %v281_v12 }
 0x258   :  { %v252_v18 = vmul.f32 %v249_v16, %v240_v14  ;;  %v290_v22 = vsel %vm287_vm9, %v289_v20, %v285_v17 }
 0x25a   :  { %v254_v21 = vadd.f32 %v252_v18, %v236_v19 }
 0x25b   :  { %v263_v23 = vld [vmem:[#allocation5] sm:$0xff] }
 0x25c   :  { %v291_v24 = vmul.f32 %v290_v22, %v263_v23  ;;  %257 = vst.msk [vmem:[#allocation5 + $0x8] sm:$0xff] %vm35_vm5, %v254_v21 }
 0x25e   :  { %308 = vst.msk [vmem:[%s483_s5] sm:$0xff] %vm35_vm5, %v291_v24 }
 0x263   :  { %v264_v35 = vld [vmem:[#allocation5 + $0x8] sm:$0xff] }
 0x267   :  { %v275_v25 = vpop.permute.xlu1 %274 }
 0x268   :  { %350 = vrcp.f32 %v275_v25  ;;  %v303_v29 = vand.u32 2147483648, %v275_v25  ;;  %v301_v31 = vand.u32 2147483647, %v275_v25  ;;  %vm297_vm11 = vweird.f32 %v275_v25 }
 0x26a   :  { %v304_v33 = vor.u32 1.1754944e-38, %v303_v29  ;;  %vm302_vm13 = vcmp.eq.f32.partialorder %v301_v31, 8.507059e+37 }
 0x26e   :  { %v351_v26 = vpop.eup %350 }
 0x26f   :  { %v293_v27 = vmul.f32 %v351_v26, %v275_v25  ;;  %vm298_vm10 = vweird.f32 %v351_v26 }
 0x270   :  { %vm299_vm12 = vmor %vm297_vm11, %vm298_vm10 }
 0x271   :  { %v294_v28 = vsub.f32 1.0, %v293_v27 }
 0x273   :  { %v295_v30 = vmul.f32 %v351_v26, %v294_v28 }
 0x275   :  { %v296_v32 = vadd.f32 %v351_v26, %v295_v30 }
 0x277   :  { %v300_v34 = vsel %vm299_vm12, %v351_v26, %v296_v32 }
 0x278   :  { %v305_v36 = vsel %vm302_vm13, %v304_v33, %v300_v34 }
 0x279   :  { %v306_v37 = vmul.f32 %v305_v36, %v264_v35 }
 0x27b   :  { %309 = vst.msk [vmem:[%s483_s5 + $0x8] sm:$0xff] %vm35_vm5, %v306_v37 }

</bundles_post_ra>
